<compile_context>
chip_gen: v7x
topology: tpu7x:2x2x1
jax: 0.10.0
libtpu: 0.0.40
codegen_flags: <defaults>
</compile_context>

<pallas_src>
import jax
import jax.numpy as jnp
from jax.experimental import pallas as pl
from jax.experimental.pallas import tpu as pltpu

LANE = 128


def actor_kernel(obs_ref, w1p_ref, w2p_ref, w3p_ref, mu_ref):
    """Packed weights: shape (in_dim + 1, out_dim), bias stored in the last row."""
    d_in = w1p_ref.shape[0] - 1
    h = w2p_ref.shape[0] - 1

    x = obs_ref[...]                                               # (B, obs_dim) f32

    # Layer 1: Linear + ReLU  (MXU matmul, f32 accumulate, VPU max)
    w1 = w1p_ref[0:d_in, :]
    b1 = w1p_ref[d_in:d_in + 1, :]
    h1 = jnp.maximum(
        jnp.dot(x, w1, preferred_element_type=jnp.float32) + b1, 0.0)

    # Layer 2: Linear + ReLU
    w2 = w2p_ref[0:h, :]
    b2 = w2p_ref[h:h + 1, :]
    h2 = jnp.maximum(
        jnp.dot(h1, w2, preferred_element_type=jnp.float32) + b2, 0.0)

    # Output head: Linear(hidden -> 128-lane padded act_dim) + tanh (EUP)
    w3 = w3p_ref[0:h, :]
    b3 = w3p_ref[h:h + 1, :]
    mu = jnp.tanh(jnp.dot(h2, w3, preferred_element_type=jnp.float32) + b3)

    mu_ref[...] = mu.astype(mu_ref.dtype)                          # (B, 128) lane-dense


def pack_params(params):
    """One-time packing: fold biases into weights (last row) and pad the output
    head to a lane-dense multiple of 128 columns."""
    (w1, b1, w2, b2, w3, b3) = params
    act_dim = w3.shape[1]
    a_pad = max(LANE, ((act_dim + LANE - 1) // LANE) * LANE)

    w1p = jnp.concatenate([w1, b1.reshape(1, -1)], axis=0)         # (obs_dim+1, H)
    w2p = jnp.concatenate([w2, b2.reshape(1, -1)], axis=0)         # (H+1, H)

    w3_pad = jnp.zeros((w3.shape[0], a_pad), w3.dtype).at[:, :act_dim].set(w3)
    b3_pad = jnp.zeros((1, a_pad), w3.dtype).at[:, :act_dim].set(b3.reshape(1, -1))
    w3p = jnp.concatenate([w3_pad, b3_pad], axis=0)                # (H+1, a_pad)
    return (w1p, w2p, w3p), act_dim


def actor_forward(obs, packed_params, *, act_dim, std=0.1):
    """obs: (B, obs_dim). Returns (mu, std_arr) — the TruncatedNormal params."""
    w1p, w2p, w3p = packed_params
    if obs.dtype != jnp.float32:
        obs = obs.astype(jnp.float32)

    B, obs_dim = obs.shape
    H = w2p.shape[1]
    A_pad = w3p.shape[1]

    cost = pl.CostEstimate(
        flops=2 * B * (obs_dim * H + H * H + H * A_pad),
        transcendentals=B * A_pad,
        bytes_accessed=4 * (obs.size + w1p.size + w2p.size + w3p.size + B * A_pad),
    )

    mu_pad = pl.pallas_call(
        actor_kernel,
        out_shape=jax.ShapeDtypeStruct((B, A_pad), jnp.float32),
        in_specs=[pl.BlockSpec(memory_space=pltpu.MemorySpace.VMEM)
                  for _ in range(4)],
        out_specs=pl.BlockSpec(memory_space=pltpu.MemorySpace.VMEM),
        cost_estimate=cost,
    )(obs, w1p, w2p, w3p)

    mu = mu_pad[:, :act_dim]
    std_arr = jnp.full((B, act_dim), std, dtype=mu.dtype)          # constant, folded by XLA
    return mu, std_arr


def init_params(key, obs_dim, hidden_dim, act_dim):
    """Deterministic synthetic init matching the torch module's shapes (as (in, out))."""
    ks = jax.random.split(key, 6)
    w1 = jax.random.normal(ks[0], (obs_dim, hidden_dim), jnp.float32) / jnp.sqrt(obs_dim)
    b1 = jax.random.normal(ks[1], (hidden_dim,), jnp.float32) * 0.01
    w2 = jax.random.normal(ks[2], (hidden_dim, hidden_dim), jnp.float32) / jnp.sqrt(hidden_dim)
    b2 = jax.random.normal(ks[3], (hidden_dim,), jnp.float32) * 0.01
    w3 = jax.random.normal(ks[4], (hidden_dim, act_dim), jnp.float32) / jnp.sqrt(hidden_dim)
    b3 = jax.random.normal(ks[5], (act_dim,), jnp.float32) * 0.01
    return (w1, b1, w2, b2, w3, b3)


def actor_forward_ref(obs, params, *, std=0.1):
    """Pure-JAX reference for verification."""
    obs = obs.astype(jnp.float32)
    (w1, b1, w2, b2, w3, b3) = params
    h1 = jnp.maximum(obs @ w1 + b1, 0.0)
    h2 = jnp.maximum(h1 @ w2 + b2, 0.0)
    mu = jnp.tanh(h2 @ w3 + b3)
    return mu, jnp.full_like(mu, std)


if __name__ == "__main__":
    key = jax.random.PRNGKey(0)
    k_obs, k_par = jax.random.split(key, 2)

    batch = 8
    obs_dim = 8
    hidden_dim = 32
    act_dim = 2
    std = 0.1

    obs = jax.random.normal(k_obs, (batch, obs_dim), jnp.float32)
    params = init_params(k_par, obs_dim, hidden_dim, act_dim)
    packed, act_dim_out = pack_params(params)      # one-time packing at init

    mu, std_arr = actor_forward(obs, packed, act_dim=act_dim_out, std=std)
    mu = jax.block_until_ready(mu)
    std_arr = jax.block_until_ready(std_arr)

    mu_ref, std_ref = actor_forward_ref(obs, params, std=std)

    assert mu.shape == (batch, act_dim)
    assert std_arr.shape == (batch, act_dim)
    assert jnp.allclose(mu, mu_ref, atol=1e-5, rtol=1e-5)
    assert jnp.allclose(std_arr, std_ref, atol=1e-7, rtol=1e-7)

    print("KERNEL_OK")
</pallas_src>

<mosaic_0001>
module attributes {stable_mosaic.version = 11 : i64} {
  func.func @actor_kernel(%arg0: memref<8x8xf32, #tpu.memory_space<vmem>>, %arg1: memref<9x32xf32, #tpu.memory_space<vmem>>, %arg2: memref<33x32xf32, #tpu.memory_space<vmem>>, %arg3: memref<33x128xf32, #tpu.memory_space<vmem>>, %arg4: memref<8x128xf32, #tpu.memory_space<vmem>>) attributes {dimension_semantics = [], scalar_prefetch = 0 : i64, scratch_operands = 0 : i64, tpu.core_type = #tpu.core_type<tc>} {
    %c0 = arith.constant 0 : index
    %c0_0 = arith.constant 0 : index
    %0 = vector.load %arg0[%c0, %c0_0] : memref<8x8xf32, #tpu.memory_space<vmem>>, vector<8x8xf32>
    %c0_1 = arith.constant 0 : index
    %c0_2 = arith.constant 0 : index
    %1 = vector.load %arg1[%c0_1, %c0_2] : memref<9x32xf32, #tpu.memory_space<vmem>>, vector<8x32xf32>
    %c8 = arith.constant 8 : index
    %c0_3 = arith.constant 0 : index
    %2 = vector.load %arg1[%c8, %c0_3] : memref<9x32xf32, #tpu.memory_space<vmem>>, vector<1x32xf32>
    %cst = arith.constant dense<0.000000e+00> : vector<8x32xf32>
    %3 = tpu.matmul %0, %1, %cst {dimension_numbers = #tpu.dot_dimension_numbers<[1], [0], [0], [1], [0, 0, 1, 1], [], []>} : vector<8x8xf32>, vector<8x32xf32>, vector<8x32xf32> -> vector<8x32xf32>
    %4 = vector.broadcast %2 : vector<1x32xf32> to vector<8x32xf32>
    %5 = arith.addf %3, %4 : vector<8x32xf32>
    %cst_4 = arith.constant 0.000000e+00 : f32
    %6 = vector.broadcast %cst_4 : f32 to vector<8x32xf32>
    %7 = arith.maximumf %5, %6 : vector<8x32xf32>
    %c0_5 = arith.constant 0 : index
    %c0_6 = arith.constant 0 : index
    %8 = vector.load %arg2[%c0_5, %c0_6] : memref<33x32xf32, #tpu.memory_space<vmem>>, vector<32x32xf32>
    %c32 = arith.constant 32 : index
    %c0_7 = arith.constant 0 : index
    %9 = vector.load %arg2[%c32, %c0_7] : memref<33x32xf32, #tpu.memory_space<vmem>>, vector<1x32xf32>
    %cst_8 = arith.constant dense<0.000000e+00> : vector<8x32xf32>
    %10 = tpu.matmul %7, %8, %cst_8 {dimension_numbers = #tpu.dot_dimension_numbers<[1], [0], [0], [1], [0, 0, 1, 1], [], []>} : vector<8x32xf32>, vector<32x32xf32>, vector<8x32xf32> -> vector<8x32xf32>
    %11 = vector.broadcast %9 : vector<1x32xf32> to vector<8x32xf32>
    %12 = arith.addf %10, %11 : vector<8x32xf32>
    %cst_9 = arith.constant 0.000000e+00 : f32
    %13 = vector.broadcast %cst_9 : f32 to vector<8x32xf32>
    %14 = arith.maximumf %12, %13 : vector<8x32xf32>
    %c0_10 = arith.constant 0 : index
    %c0_11 = arith.constant 0 : index
    %15 = vector.load %arg3[%c0_10, %c0_11] : memref<33x128xf32, #tpu.memory_space<vmem>>, vector<32x128xf32>
    %c32_12 = arith.constant 32 : index
    %c0_13 = arith.constant 0 : index
    %16 = vector.load %arg3[%c32_12, %c0_13] : memref<33x128xf32, #tpu.memory_space<vmem>>, vector<1x128xf32>
    %cst_14 = arith.constant dense<0.000000e+00> : vector<8x128xf32>
    %17 = tpu.matmul %14, %15, %cst_14 {dimension_numbers = #tpu.dot_dimension_numbers<[1], [0], [0], [1], [0, 0, 1, 1], [], []>} : vector<8x32xf32>, vector<32x128xf32>, vector<8x128xf32> -> vector<8x128xf32>
    %18 = vector.broadcast %16 : vector<1x128xf32> to vector<8x128xf32>
    %19 = arith.addf %17, %18 : vector<8x128xf32>
    %20 = math.tanh %19 : vector<8x128xf32>
    %c0_15 = arith.constant 0 : index
    %c0_16 = arith.constant 0 : index
    %21 = vector.load %arg4[%c0_15, %c0_16] : memref<8x128xf32, #tpu.memory_space<vmem>>, vector<8x128xf32>
    tpu.vector_store %arg4[%c0_15, %c0_16], %20 {strides = array<i32>} : memref<8x128xf32, #tpu.memory_space<vmem>>, vector<8x128xf32>,
    return
  }
}

</mosaic_0001>

<bundles_post_ra>
// kernel: tpu_custom_call.1
= control target key start
LH: loop header
LB: loop body
LE: loop exit
PB: predicated region body
PF: predicated region fallthrough
CT: control target
= control target key end

     0   :  { %vm25_vm0 = vcmask 64512   ;;  %v369_v2 = vmov 0.0   ;;  %vm370_vm1 = vmmov 0   ;;  %v371_v5 = vmov 0.0|0.0   ;;  %s449_s0 = inlined_call_operand.vmem [shape: f32[8,8], index: 0, kind: input, shape index: {}]   ;;  %s450_s1 = inlined_call_operand.vmem [shape: f32[9,32], index: 1, kind: input, shape index: {}]   ;;  %s451_s2 = inlined_call_operand.vmem [shape: f32[33,32], index: 2, kind: input, shape index: {}]   ;;  %s452_s3 = inlined_call_operand.vmem [shape: f32[33,128], index: 3, kind: input, shape index: {}]   ;;  %s453_s4 = inlined_call_operand.hbm [shape: f32[8,128], index: 4, kind: output, shape index: {}]  }
   0x1   :  { %v19_v0 = vld [vmem:[%s450_s1] sm:$0xff]  ;;  %300 = vmatprep.subr.mxu0 %v369_v2  ;;  %302 = vmatprep.mubr.msk.f32.mxu0 %vm370_vm1, %v369_v2  ;;  %v101_v4 = vld [vmem:[%s451_s2 + $0x8] sm:$0xff] }
   0x2   :  { %v18_v1 = vld [vmem:[%s449_s0] sm:$0xff]  ;;  %301 = vmatpush3.msra.mxu0 %v19_v0  ;;  %327 = vmatprep.subr.bf16.mxu1 %v371_v5 }
   0x3   :  { %v100_v3 = vld [vmem:[%s451_s2] sm:$0xff] }
   0x4   :  { %v328_v6 = vpack.c.bf16 %v101_v4, %v100_v3 }
   0x5   :  { %9 = vsyncpa [#allocation3], 0  ;;  %303 = vmatmul.mubr.msk.f32.vlgmr.msra.gmra.mrb[0].mxu0 %vm25_vm0, %v18_v1  ;;  %313 = vmatprep.mubr.msk.f32.mxu1 %vm370_vm1, %v369_v2  ;;  %v102_v7 = vld [vmem:[%s451_s2 + $0x10] sm:$0xff]  ;;  %v103_v8 = vld [vmem:[%s451_s2 + $0x18] sm:$0xff]  ;;  %vm109_vm2 = vcmask 261120   ;;  %s372_s13 = smov [#allocation2]  }
   0x6   :  { %329 = vmatpush3.bf16.msra.mxu1 %v328_v6  ;;  %333 = vmatprep.subr.bf16.mxu0 %v371_v5  ;;  %v331_v9 = vpack.c.bf16 %v103_v8, %v102_v7  ;;  %v184_v10 = vld [vmem:[%s452_s3] sm:$0xff]  ;;  %v185_v11 = vld [vmem:[%s452_s3 + $0x8] sm:$0xff]  ;;  %v186_v18 = vld [vmem:[%s452_s3 + $0x10] sm:$0xff]  ;;  %s274_s14 = sshll.u32 %s372_s13, 4  ;;  %s275_s14 = int_to_ptr.vmem [resolvable:$true] %s274_s14 }
   0x7   :  { %330 = vmatprep.subr.bf16.mxu1 %v371_v5  ;;  %324 = vmatprep.mubr.msk.f32.mxu0 %vm370_vm1, %v369_v2  ;;  %v334_v12 = vpack.c.bf16 %v185_v11, %v184_v10  ;;  %v282_v13 = vld [vmem:[%s450_s1 + $0x8] ss:$0 sm:$0xff]  ;;  %v187_v19 = vld [vmem:[%s452_s3 + $0x18] sm:$0xff]  ;;  %v284_v21 = vld [vmem:[%s451_s2 + $0x20] ss:$0 sm:$0xff]  ;;  %s345_s15 = scalar_lea.vmem %s275_s14, 128  ;;  %p350_p1 = scmp.lt.s32.totalorder %s275_s14, %s275_s14 }
   0x8   :  { %v337_v20 = vpack.c.bf16 %v187_v19, %v186_v18  ;;  %v286_v26 = vld [vmem:[%s452_s3 + $0x20] ss:$0 sm:$0xff]  ;;  %p346_p0 = scmp.ne.s32.totalorder %s275_s14, %s345_s15  ;;  %p351_p2 = scmp.lt.s32.totalorder %s345_s15, %s345_s15 }
   0x9   :  { %335 = vmatpush3.bf16.msra.mxu0 %v334_v12 }
   0xa   :  { %332 = vmatpush3.bf16.msra.mxu1 %v331_v9  ;;  %336 = vmatprep.subr.bf16.mxu0 %v371_v5  ;;  %p352_p3 = por %p351_p2, %p350_p1 }
   0xc   :  { %p353_p4 = pnand %p352_p3, %p346_p0 }
   0xd   :  { %338 = vmatpush3.bf16.msra.mxu0 %v337_v20 }
  0xd8   :  { %v95_v14 = vpop.f32.mrb[0].mxu0 }
  0xd9   :  { %v96_v15 = vadd.f32 %v282_v13, %v95_v14  ;;  %v304_v16 = vpop.f32.mrb[1].mxu0 }
  0xdb   :  { %v99_v17 = vmax.f32 %v96_v15, 0.0 }
  0xdd   :  { %314 = vmatmul.mubr.msk.f32.vlgmr.msra.gmra.mrb[0].mxu1 %vm109_vm2, %v99_v17 }
 0x1b0   :  { %v179_v22 = vpop.f32.mrb[0].mxu1 }
 0x1b1   :  { %v180_v23 = vadd.f32 %v284_v21, %v179_v22  ;;  %v315_v24 = vpop.f32.mrb[1].mxu1 }
 0x1b3   :  { %v183_v25 = vmax.f32 %v180_v23, 0.0 }
 0x1b5   :  { %325 = vmatmul.mubr.msk.f32.vlgmr.msra.gmra.mrb[2].mxu0 %vm109_vm2, %v183_v25 }
 0x288   :  { %v262_v27 = vpop.f32.mrb[2].mxu0 }
 0x289   :  { %v263_v28 = vadd.f32 %v286_v26, %v262_v27  ;;  %v326_v29 = vpop.f32.mrb[3].mxu0 }
 0x28b   :  { %343 = vtanh.f32 %v263_v28 }
 0x295   :  { %v344_v30 = vpop.eup %343 }
 0x296   :  { %267 = vst [vmem:[#allocation2] sm:$0xff] %v344_v30 }
 0x297   :  { %356 = shalt.err (!%p353_p4)
}
 0x298   :  { %s357_s3 = scalar_lea.hbm %s453_s4, 128 }
 0x299   :  { %p358_p5 = scmp.ne.s32.totalorder %s453_s4, %s357_s3  ;;  %p361_p6 = scmp.lt.u32.totalorder %s357_s3, %s453_s4 }
 0x29b   :  { %p363_p7 = pnand %p361_p6, %p358_p5 }
 0x29d   :  { %366 = shalt.err (!%p363_p7)
}
 0x29e   :  { %277 = dma.vmem_to_hbm [thread:$0]  %s275_s14, 128, %s453_s4, [#allocation3]  }
 0x29f   :  { %367 = dma.done.wait [#allocation3], 128  }
 0x2a0   :  { %368 = vsyncadd [#allocation3], 4294967168 }
 0x2a1   :  { %281 = vsyncpa [#allocation3], 1 }

</bundles_post_ra>
